<compile_context>
chip_gen: v7x
topology: tpu7x:2x2x1
jax: 0.10.0
libtpu: 0.0.40
codegen_flags: <defaults>
</compile_context>

<pallas_src>
import functools

import jax
import jax.numpy as jnp
from jax.experimental import pallas as pl
from jax.experimental.pallas import tpu as pltpu

_LANE = 128


def _sublane_align(dtype):
    # Packed-sublane granularity: f32 -> 8, bf16 -> 16, int8/fp8 -> 32.
    return {1: 32, 2: 16}.get(jnp.dtype(dtype).itemsize, 8)


def _pick_tile(total, target, align):
    """Largest tile <= target that divides `total` and is a multiple of `align`.
    Falls back to the full extent (a full-extent block dim is always legal)."""
    if total <= target:
        return total
    t = (target // align) * align
    while t >= align:
        if total % t == 0:
            return t
        t -= align
    return total


def _device_kind():
    try:
        return jax.devices()[0].device_kind.lower()
    except Exception:
        return ""


def _physical_vmem_bytes(kind):
    try:
        return int(pltpu.get_tpu_info().vmem_capacity_bytes)
    except Exception:
        pass
    # Generation-aware fallback: only v7x has 64 MiB per TensorCore;
    # v5e / v6e (and earlier large-VMEM parts) have 128 MiB.
    return (64 if "v7" in kind else 128) * 1024 * 1024


def _ese_fused_kernel(x_ref, w_ref, b_ref, o_ref, *, inv_hw, use_mxu):
    # x_ref: (C, HW) native dtype; w_ref: (C, C) f32 (= W/6);
    # b_ref: (C, 1) f32 (= (b+3)/6); o_ref: (C, HW).
    #
    # Global average pool accumulated in f32.  The slab value is NOT kept live
    # across the gate computation (re-read below for the multiply).
    se = jnp.sum(x_ref[...], axis=-1, keepdims=True, dtype=jnp.float32) * inv_hw  # (C,1)

    if use_mxu:
        # Tiny matvec on the MXU; fully hidden under the slab DMA.
        z = jnp.dot(w_ref[...], se, preferred_element_type=jnp.float32)
    else:
        # Small C: VPU multiply + lane reduce (avoids degenerate MXU shapes).
        z = jnp.sum(w_ref[...] * se.reshape(1, -1), axis=1, keepdims=True)
    z = z + b_ref[...]

    # Hardsigmoid with pre-folded constants: clip(W/6 @ mean + (b+3)/6, 0, 1).
    gate = jnp.clip(z, 0.0, 1.0).astype(o_ref.dtype)                              # (C,1)

    # Re-read the VMEM-resident input block for the broadcast multiply.
    o_ref[...] = x_ref[...] * gate


def _ese_scale_kernel(x_ref, g_ref, o_ref):
    # x_ref: (1, tC, HW); g_ref: (1, tC, 1); pure broadcast multiply.
    o_ref[...] = x_ref[...] * g_ref[...]


def effective_se_layer(x, weight, bias, *, force_split=False, donate_x=False):
    """x: (N, C, H, W); weight: (C, C) (Conv2d(C,C,1) kernel squeezed); bias: (C,)."""
    N, C, H, W = x.shape
    HW = H * W
    x_dtype = x.dtype
    itemsize = jnp.dtype(x_dtype).itemsize

    kind = _device_kind()
    is_v7 = "v7" in kind
    phys_vmem = _physical_vmem_bytes(kind)

    x_flat = x.reshape(N, C, HW)

    # Fold the hardsigmoid constants into the 1x1-conv parameters (f32):
    #   hardsigmoid(W @ m + b) = clip((W/6) @ m + (b + 3)/6, 0, 1)
    w_f = weight.astype(jnp.float32) * (1.0 / 6.0)                   # (C, C)
    b_f = (bias.astype(jnp.float32) + 3.0) * (1.0 / 6.0)             # (C,)

    # Fused-path VMEM footprint: double-buffered in/out (C, HW) slabs + params.
    fused_need = 4 * C * HW * itemsize + 4 * (C * C + C) * 4
    # v7x: only 64 MiB per TC and the split fallback costs 1.5x HBM traffic,
    # so allow a larger fraction of VMEM before falling back.
    fused_budget = (0.78 if is_v7 else 0.6) * phys_vmem
    use_fused = (not force_split) and fused_need <= fused_budget
    # Megacore balance: grid=(N,) is the only axis sharded across v7x's two
    # TensorCores; with N == 1 prefer the split path's all-parallel grid.
    # (For N <= 2-4 the fused DMA prologue is partially exposed as well; the
    #  crossover vs. the 3-pass split is shape-dependent.)
    if is_v7 and N < 2:
        use_fused = False

    vmem_cap = int(phys_vmem - (10 << 20)) if is_v7 else int(0.9 * phys_vmem)

    if use_fused:
        vmem_limit = int(min(max(1.3 * fused_need + (4 << 20), 32 << 20), vmem_cap))
        cost = pl.CostEstimate(
            flops=int(N * (2 * C * C + 2 * C * HW)),
            transcendentals=0,
            bytes_accessed=int(2 * N * C * HW * itemsize + (C * C + C) * 4),
        )
        out_flat = pl.pallas_call(
            functools.partial(_ese_fused_kernel, inv_hw=1.0 / HW,
                              use_mxu=(C >= 256)),
            out_shape=jax.ShapeDtypeStruct((N, C, HW), x_dtype),
            grid_spec=pltpu.PrefetchScalarGridSpec(
                num_scalar_prefetch=0,
                grid=(N,),
                in_specs=[
                    pl.BlockSpec((pl.Squeezed(), C, HW), lambda n: (n, 0, 0)),
                    pl.BlockSpec((C, C), lambda n: (0, 0)),
                    pl.BlockSpec((C, 1), lambda n: (0, 0)),
                ],
                out_specs=pl.BlockSpec((pl.Squeezed(), C, HW),
                                       lambda n: (n, 0, 0)),
            ),
            compiler_params=pltpu.CompilerParams(
                dimension_semantics=("parallel",),
                vmem_limit_bytes=vmem_limit),
            cost_estimate=cost,
        )(x_flat, w_f, b_f.reshape(C, 1))
        return out_flat.reshape(N, C, H, W)

    # ---------------- Split path ----------------
    # (a) Gate prepass: batch all N means into one (N,C)@(C,C) matmul (plain
    #     XLA; negligible next to the broadcast multiply).
    means = jnp.mean(x_flat, axis=-1, dtype=jnp.float32)             # (N, C)
    z = means @ w_f.T + b_f
    gate = jnp.clip(z, 0.0, 1.0).astype(x_dtype).reshape(N, C, 1)

    # (b) Tiled broadcast-multiply kernel.  Full HW per block (lane-dense, no
    #     padding); channel tile chosen from a per-block byte budget with
    #     dtype-aware sublane alignment.  All grid axes are parallel.
    sub = _sublane_align(x_dtype)
    block_budget = (3 << 20) if is_v7 else (6 << 20)
    tC_target = max(sub, block_budget // max(1, HW * itemsize))
    tC = _pick_tile(C, min(C, tC_target), sub)
    grid = (N, C // tC)

    split_need = 4 * tC * HW * itemsize + 4 * tC * itemsize
    vmem_limit = int(min(max(1.3 * split_need + (4 << 20), 32 << 20), vmem_cap))
    cost = pl.CostEstimate(
        flops=int(N * C * HW),
        transcendentals=0,
        bytes_accessed=int(2 * N * C * HW * itemsize + N * C * itemsize),
    )
    out_flat = pl.pallas_call(
        _ese_scale_kernel,
        out_shape=jax.ShapeDtypeStruct((N, C, HW), x_dtype),
        grid_spec=pltpu.PrefetchScalarGridSpec(
            num_scalar_prefetch=0,
            grid=grid,
            in_specs=[
                pl.BlockSpec((1, tC, HW), lambda n, ci: (n, ci, 0)),
                pl.BlockSpec((1, tC, 1), lambda n, ci: (n, ci, 0)),
            ],
            out_specs=pl.BlockSpec((1, tC, HW), lambda n, ci: (n, ci, 0)),
        ),
        compiler_params=pltpu.CompilerParams(
            dimension_semantics=("parallel", "parallel"),
            vmem_limit_bytes=vmem_limit),
        cost_estimate=cost,
        input_output_aliases=({0: 0} if donate_x else {}),
    )(x_flat, gate)
    return out_flat.reshape(N, C, H, W)


def _reference(x, weight, bias):
    # Pure-JAX reference of the PyTorch forward.
    se = jnp.mean(x, axis=(2, 3), keepdims=True)                     # (N,C,1,1)
    se = jnp.einsum("oc,nchw->nohw", weight, se) + bias.reshape(1, -1, 1, 1)
    gate = jnp.clip((se + 3.0) / 6.0, 0.0, 1.0)
    return x * gate


def _make_params(key, C):
    # Deterministic synthetic Conv2d(C, C, 1) parameters (kernel squeezed to (C, C)).
    kw, kb = jax.random.split(key)
    bound = 1.0 / (C ** 0.5)  # fan_in = C * 1 * 1
    weight = jax.random.uniform(kw, (C, C), minval=-bound, maxval=bound,
                                dtype=jnp.float32)
    bias = jax.random.uniform(kb, (C,), minval=-bound, maxval=bound,
                              dtype=jnp.float32)
    return weight, bias


if __name__ == "__main__":
    key = jax.random.PRNGKey(0)
    k_p1, k_x1, k_x2, k_p2, k_x3 = jax.random.split(key, 5)

    # 1) Small shapes (N=2, C=4, 16x16): fused path (VPU matvec) + split path.
    N, C, H, W = 2, 4, 16, 16
    weight, bias = _make_params(k_p1, C)
    x = jax.random.normal(k_x1, (N, C, H, W), dtype=jnp.float32)
    ref = _reference(x, weight, bias)

    out_fused = jax.block_until_ready(effective_se_layer(x, weight, bias))
    assert out_fused.shape == (N, C, H, W)
    assert jnp.allclose(out_fused, ref, atol=1e-5, rtol=1e-5), "fused mismatch"

    out_split = jax.block_until_ready(
        effective_se_layer(x, weight, bias, force_split=True))
    assert jnp.allclose(out_split, ref, atol=1e-5, rtol=1e-5), "split mismatch"

    # 2) Non-128-multiple spatial size (7x7 -> HW=49): full-extent last block
    #    dim, no pad/slice, both paths.
    x_small = jax.random.normal(k_x2, (N, C, 7, 7), dtype=jnp.float32)
    ref_small = _reference(x_small, weight, bias)
    out_small = jax.block_until_ready(effective_se_layer(x_small, weight, bias))
    assert jnp.allclose(out_small, ref_small, atol=1e-5, rtol=1e-5), \
        "fused (HW=49) mismatch"
    out_small_split = jax.block_until_ready(
        effective_se_layer(x_small, weight, bias, force_split=True))
    assert jnp.allclose(out_small_split, ref_small, atol=1e-5, rtol=1e-5), \
        "split (HW=49) mismatch"

    # 3) Larger channel count (C=256, 8x8): exercises the MXU matvec branch in
    #    the fused kernel and the tile-budget logic in the split path.
    #    (MXU / XLA matmul default precision differs slightly from the pure-VPU
    #    reference path, so a looser tolerance is used.)
    C2 = 256
    weight2, bias2 = _make_params(k_p2, C2)
    x_big = jax.random.normal(k_x3, (N, C2, 8, 8), dtype=jnp.float32)
    ref_big = _reference(x_big, weight2, bias2)
    out_big = jax.block_until_ready(effective_se_layer(x_big, weight2, bias2))
    assert jnp.allclose(out_big, ref_big, atol=2e-3, rtol=2e-3), \
        "fused (C=256) mismatch"
    out_big_split = jax.block_until_ready(
        effective_se_layer(x_big, weight2, bias2, force_split=True))
    assert jnp.allclose(out_big_split, ref_big, atol=2e-3, rtol=2e-3), \
        "split (C=256) mismatch"

    print("KERNEL_OK")
</pallas_src>

<mosaic_0001>
module attributes {stable_mosaic.version = 11 : i64} {
  func.func @_ese_fused_kernel(%arg0: i32, %arg1: memref<1x4x256xf32, #tpu.memory_space<vmem>>, %arg2: memref<4x4xf32, #tpu.memory_space<vmem>>, %arg3: memref<4x1xf32, #tpu.memory_space<vmem>>, %arg4: memref<1x4x256xf32, #tpu.memory_space<vmem>>) attributes {dimension_semantics = [#tpu.dimension_semantics<parallel>], iteration_bounds = array<i64: 2>, scalar_prefetch = 0 : i64, scratch_operands = 0 : i64, tpu.core_type = #tpu.core_type<tc>, window_params = [{transform_indices = @transform_0, window_bounds = array<i64: 1, 4, 256>}, {pipeline_mode = #tpu.pipeline_mode<synchronous>, transform_indices = @transform_1, window_bounds = array<i64: 4, 4>}, {pipeline_mode = #tpu.pipeline_mode<synchronous>, transform_indices = @transform_2, window_bounds = array<i64: 4, 1>}, {transform_indices = @transform_3, window_bounds = array<i64: 1, 4, 256>}]} {
    %c0 = arith.constant 0 : index
    %c0_0 = arith.constant 0 : index
    %c0_1 = arith.constant 0 : index
    %0 = vector.load %arg1[%c0, %c0_0, %c0_1] : memref<1x4x256xf32, #tpu.memory_space<vmem>>, vector<1x4x256xf32>
    %1 = vector.shape_cast %0 : vector<1x4x256xf32> to vector<4x256xf32>
    %cst = arith.constant dense<0.000000e+00> : vector<4xf32>
    %2 = vector.multi_reduction <add>, %1, %cst [1] : vector<4x256xf32> to vector<4xf32>
    %3 = vector.shape_cast %2 : vector<4xf32> to vector<4x1xf32>
    %cst_2 = arith.constant 3.906250e-03 : f32
    %4 = vector.broadcast %cst_2 : f32 to vector<4x1xf32>
    %5 = arith.mulf %3, %4 : vector<4x1xf32>
    %c0_3 = arith.constant 0 : index
    %c0_4 = arith.constant 0 : index
    %6 = vector.load %arg2[%c0_3, %c0_4] : memref<4x4xf32, #tpu.memory_space<vmem>>, vector<4x4xf32>
    %7 = vector.shape_cast %5 : vector<4x1xf32> to vector<1x4xf32>
    %8 = vector.broadcast %7 : vector<1x4xf32> to vector<4x4xf32>
    %9 = arith.mulf %6, %8 : vector<4x4xf32>
    %cst_5 = arith.constant dense<0.000000e+00> : vector<4xf32>
    %10 = vector.multi_reduction <add>, %9, %cst_5 [1] : vector<4x4xf32> to vector<4xf32>
    %11 = vector.shape_cast %10 : vector<4xf32> to vector<4x1xf32>
    %c0_6 = arith.constant 0 : index
    %c0_7 = arith.constant 0 : index
    %12 = vector.load %arg3[%c0_6, %c0_7] : memref<4x1xf32, #tpu.memory_space<vmem>>, vector<4x1xf32>
    %13 = arith.addf %11, %12 : vector<4x1xf32>
    %cst_8 = arith.constant 0.000000e+00 : f32
    %cst_9 = arith.constant 1.000000e+00 : f32
    %14 = vector.broadcast %cst_8 : f32 to vector<4x1xf32>
    %15 = arith.maximumf %14, %13 : vector<4x1xf32>
    %16 = vector.broadcast %cst_9 : f32 to vector<4x1xf32>
    %17 = arith.minimumf %16, %15 : vector<4x1xf32>
    %c0_10 = arith.constant 0 : index
    %c0_11 = arith.constant 0 : index
    %c0_12 = arith.constant 0 : index
    %18 = vector.load %arg1[%c0_10, %c0_11, %c0_12] : memref<1x4x256xf32, #tpu.memory_space<vmem>>, vector<1x4x256xf32>
    %19 = vector.shape_cast %18 : vector<1x4x256xf32> to vector<4x256xf32>
    %20 = vector.broadcast %17 : vector<4x1xf32> to vector<4x256xf32>
    %21 = arith.mulf %19, %20 : vector<4x256xf32>
    %c0_13 = arith.constant 0 : index
    %c0_14 = arith.constant 0 : index
    %c0_15 = arith.constant 0 : index
    %22 = vector.load %arg4[%c0_13, %c0_14, %c0_15] : memref<1x4x256xf32, #tpu.memory_space<vmem>>, vector<1x4x256xf32>
    %23 = vector.shape_cast %22 : vector<1x4x256xf32> to vector<4x256xf32>
    %24 = vector.shape_cast %21 : vector<4x256xf32> to vector<1x4x256xf32>
    tpu.vector_store %arg4[%c0_13, %c0_14, %c0_15], %24 {strides = array<i32>} : memref<1x4x256xf32, #tpu.memory_space<vmem>>, vector<1x4x256xf32>,
    return
  }
  func.func @transform_0(%arg0: i32) -> (i32, i32, i32) {
    %c0_i32 = arith.constant 0 : i32
    %c0_i32_0 = arith.constant 0 : i32
    %c0_i32_1 = arith.constant 0 : i32
    return %arg0, %c0_i32, %c0_i32_0 : i32, i32, i32
  }
  func.func @transform_1(%arg0: i32) -> (i32, i32) {
    %c0_i32 = arith.constant 0 : i32
    %c0_i32_0 = arith.constant 0 : i32
    %c0_i32_1 = arith.constant 0 : i32
    return %c0_i32, %c0_i32_0 : i32, i32
  }
  func.func @transform_2(%arg0: i32) -> (i32, i32) {
    %c0_i32 = arith.constant 0 : i32
    %c0_i32_0 = arith.constant 0 : i32
    %c0_i32_1 = arith.constant 0 : i32
    return %c0_i32, %c0_i32_0 : i32, i32
  }
  func.func @transform_3(%arg0: i32) -> (i32, i32, i32) {
    %c0_i32 = arith.constant 0 : i32
    %c0_i32_0 = arith.constant 0 : i32
    %c0_i32_1 = arith.constant 0 : i32
    return %arg0, %c0_i32, %c0_i32_0 : i32, i32, i32
  }
}

</mosaic_0001>

<bundles_post_ra>
// kernel: tpu_custom_call.1
= control target key start
LH: loop header
LB: loop body
LE: loop exit
PB: predicated region body
PF: predicated region fallthrough
CT: control target
= control target key end

     0   :  { %8 = vsyncpa [#allocation3], 0  ;;  %s679_s0 = inlined_call_operand.hbm [shape: f32[2,4,256], index: 0, kind: input, shape index: {}]   ;;  %s680_s1 = inlined_call_operand.vmem [shape: f32[4,4], index: 1, kind: input, shape index: {}]   ;;  %s681_s2 = inlined_call_operand.vmem [shape: f32[4,1], index: 2, kind: input, shape index: {}]   ;;  %s682_s3 = inlined_call_operand.hbm [shape: f32[2,4,256], index: 3, kind: output, shape index: {}]  }
   0x1   :  { %10 = vsyncpa [#allocation3 + $0x1], 0 }
   0x2   :  { %11 = vsyncpa [#allocation4], 0 }
   0x3   :  { %13 = vsyncpa [#allocation4 + $0x1], 0  ;;  %s508_s12 = smov 0   ;;  %s510_s13 = smov 0  }
   0x4   :  { %s512_s14 = smov 0   ;;  %s514_s15 = smov 0  }
   0x5 LB: > { %s529_s16 = sadd.s32 4294967295, %s482_s15   ;;  %s319_s17 = sadd.s32 4294967294, %s482_s15   ;;  %s482_s15 = sphi %s514_s15, %s697_s15   ;;  %s478_s14 = sphi %s512_s14, %s696_s14   ;;  %s474_s13 = sphi %s510_s13, %s695_s13   ;;  %s470_s12 = sphi %s508_s12, %s694_s12  }
   0x6   : > { %s533_s18 = sadd.s32 1, %s482_s15   ;;  %s26_s19 = sadd.s32 1, %s478_s14 }
   0x7   : > { %s23_s20 = ssub.s32 %s482_s15, %s533_s18  ;;  %p33_p0 = scmp.ne.s32.totalorder %s478_s14, %s474_s13 }
   0x8   : > { %p24_p1 = scmp.eq.s32.totalorder %s23_s20, 0  ;;  %p34_p2 = scmp.eq.s32.totalorder %s482_s15, 0 }
   0x9   : > { %p39_p3 = scmp.ne.s32.totalorder %s474_s13, %s470_s12  ;;  %p40_p4 = scmp.eq.s32.totalorder %s529_s16, 0 }
   0xa   : > { %s545_s21 = scalar_select %p24_p1, %s478_s14, %s26_s19  }
   0xb   : > { %p547_p5 = por %p34_p2, %p33_p0  ;;  %p551_p6 = por %p40_p4, %p39_p3 }
   0xc   : > { %p105_p7 = scmp.eq.s32.totalorder %s529_s16, 1  ;;  %p111_p8 = scmp.eq.s32.totalorder %s319_s17, 1 }
   0xd   : > { %p347_p10 = scmp.lt.s32.totalorder %s482_s15, 2  ;;  %s137_s26 = sand.u32 1, %s478_s14  }
   0xe   : > { %p558_p11 = por %p105_p7, %p33_p0  ;;  %p562_p12 = por %p111_p8, %p39_p3 }
   0xf   : > { %s333_s27 = sshll.u32 %s482_s15, 7  ;;  %s322_s28 = sshll.u32 %s137_s26, 3 }
  0x10   : > { %s686_s24 = scalar_select %p558_p11, 1, 0 }
  0x11   : > { %s687_s25 = scalar_select %p562_p12, 1, 0 }
  0x12   : > { %s571_s4 = scalar_lea.hbm %s679_s0, %s333_s27  ;;  %s141_s5 = scalar_lea.vmem [#allocation2], %s322_s28 }
  0x13   : > { %s149_s6 = sshll.u32 %s141_s5, 4  ;;  %p575_p13 = pnand %p347_p10, %p547_p5  ;;  %s579_s6 = int_to_ptr.vmem [resolvable:$true] %s149_s6 }
  0x14   : > { %s138_s8 = scalar_lea.sflag [#allocation3], %s137_s26  ;;  %s386_s9 = scalar_lea.hbm %s571_s4, 128 }
  0x15   : > { %p387_p2 = scmp.ne.s32.totalorder %s571_s4, %s386_s9  ;;  %p388_p3 = pneg %p575_p13 }
  0x16   : > { %s391_s17 = scalar_lea.hbm %s679_s0, 256  ;;  %p392_p5 = scmp.lt.u32.totalorder %s571_s4, %s679_s0 }
  0x17   : > { %p389_p4 = pnand %p388_p3, %p387_p2  ;;  %p393_p8 = scmp.lt.u32.totalorder %s391_s17, %s386_s9 }
  0x18   : > { %p395_p9 = scmp.lt.u32.totalorder %s386_s9, %s571_s4 }
  0x19   : > { %p390_p7 = pneg %p389_p4  ;;  %p394_p10 = por %p393_p8, %p392_p5 }
  0x1b   : > { %p396_p0 = por %p395_p9, %p394_p10 }
  0x1d   : > { %p397_p1 = pnand %p396_p0, %p390_p7 }
  0x1f   : > { %400 = shalt.err (!%p397_p1)
}
  0x20   : > { %s401_s22 = scalar_lea.vmem %s579_s6, 128  ;;  %s484_s26 = smov [#allocation2]  }
  0x21   : > { %p402_p2 = scmp.ne.s32.totalorder %s579_s6, %s401_s22  ;;  %s406_s27 = sshll.u32 %s484_s26, 4  ;;  %s407_s27 = int_to_ptr.vmem [resolvable:$false] %s406_s27 }
  0x22   : > { %s408_s28 = scalar_lea.vmem %s407_s27, 256  ;;  %p409_p11 = scmp.lt.s32.totalorder %s579_s6, %s407_s27 }
  0x23   : > { %p404_p4 = pnand %p402_p2, %p388_p3  ;;  %p410_p5 = scmp.lt.s32.totalorder %s408_s28, %s401_s22 }
  0x25   : > { %p405_p12 = pneg %p404_p4  ;;  %p411_p8 = por %p410_p5, %p409_p11 }
  0x27   : > { %p412_p9 = pnand %p411_p8, %p405_p12 }
  0x29   : > { %415 = shalt.err (!%p412_p9)
}
  0x2a   : > { %342 = dma.hbm_to_vmem [thread:$0]  (!%p575_p13), %s571_s4, 128, %s579_s6, %s138_s8  }
  0x2b   : > { %p689_p0 = scmp.lt.s32.totalorder %s482_s15, 3  ;;  %p690_p1 = scmp.ge.s32.totalorder %s482_s15, 1 }
  0x2d   : > { %p155_p3 = pnand %p690_p1, %p689_p0 }
  0x2e   : > { %s613_s29 = sand.u32 (!%p155_p3), 1, %s474_s13  }
  0x2f   : > { %158 = sbr.rel (%p155_p3) target bundleno = 504 (0x1f8), region = 32  ;;  %s326_s30 = sshll.u32 (!%p155_p3), %s613_s29, 3 }
  0x30   : > { %s161_s5 = scalar_lea.sflag (!%p155_p3), [#allocation3], %s613_s29  ;;  %s164_s7 = scalar_lea.vmem (!%p155_p3), [#allocation2], %s326_s30 }
  0x36   : > { %461 = dma.done.wait (%p551_p6), %s161_s5, 128  }
  0x37   : > { %463 = vsyncadd (%p551_p6), %s161_s5, 4294967168  ;;  %vm191_vm0 = vcmask 1043456   ;;  %v187_v0 = vld [vmem:[%s164_s7] sm:$0xff]  ;;  %v200_v5 = vlaneseq  ;;  %vm212_vm1 = vcmask 27648   ;;  %v485_v15 = vmov 0   ;;  %s334_s9 = sshll.u32 %s529_s16, 7 }
  0x38   : > { %v189_v1 = vcombine.high %v187_v0, %v187_v0  ;;  %v192_v2 = vsel %vm191_vm0, %v187_v0, 0.0  ;;  %v198_v11 = vld [vmem:[%s680_s1] sm:$0xf]  ;;  %383 = vset.pattern.permute.xlu1 %v485_v15  ;;  %384 = vset.pattern.permute.xlu0 %v485_v15  ;;  %v486_v21 = vmov 839922192   ;;  %s186_s10 = scalar_lea.vmem [#allocation5], %s326_s30  ;;  %s635_s20 = scalar_lea.hbm %s682_s3, %s334_s9 }
  0x39   : > { %v201_v6 = vand.u32 127, %v200_v5  ;;  %v203_v7 = vshrl.u32 %v200_v5, 7  ;;  %v216_v16 = vld [vmem:[%s681_s2] sm:$0xf]  ;;  %v225_v22 = vunpack.c.l.s4 %v486_v21  ;;  %s249_s11 = sshll.u32 %s186_s10, 4  ;;  %s235_s22 = scalar_lea.sflag [#allocation4], %s613_s29  ;;  %s637_s11 = int_to_ptr.vmem [resolvable:$true] %s249_s11 }
  0x3a   : > { %v193_v3 = vsel %vm191_vm0, %v189_v1, 0.0  ;;  %s416_s26 = scalar_lea.vmem %s637_s11, 128  ;;  %p691_p11 = scmp.ne.s32.totalorder %s686_s24, 0 }
  0x3b   : > { %v194_v4 = vadd.f32 %v193_v3, %v192_v2  ;;  %v204_v8 = vsub.s32 %v201_v6, %v203_v7  ;;  %v226_v23 = vunpack.c.0.s8 %v225_v22  ;;  %p417_p6 = scmp.ne.s32.totalorder %s637_s11, %s416_s26  ;;  %s487_s16 = smov [#allocation5]  }
  0x3c   : > { %s420_s27 = sshll.u32 %s487_s16, 4  ;;  %s421_s27 = int_to_ptr.vmem [resolvable:$false] %s420_s27 }
  0x3d   : > { %195 = vadd.xlane.f32.xlu0 %v194_v4  ;;  %v229_v24 = vsub.s32 %v226_v23, %v203_v7  ;;  %p418_p12 = pnand %p417_p6, %p691_p11  ;;  %s422_s28 = scalar_lea.vmem %s421_s27, 256 }
  0x3e   : > { %p423_p7 = scmp.lt.s32.totalorder %s637_s11, %s421_s27  ;;  %p424_p10 = scmp.lt.s32.totalorder %s422_s28, %s416_s26 }
  0x3f   : > { %p419_p13 = pneg %p418_p12 }
  0x40   : > { %p425_p2 = por %p424_p10, %p423_p7 }
  0x42   : > { %p426_p4 = pnand %p425_p2, %p419_p13 }
  0xca   : > { %v196_v9 = vpop.xlane.xlu0 %195 }
  0xcb   : > { %v197_v10 = vmul.f32 0.00390625, %v196_v9 }
  0xcd   : > { %v205_v12 = vrot.slane %v197_v10, %v204_v8 }
  0xcf   : > { %v211_v13 = vmul.f32 %v205_v12, %v198_v11 }
  0xd1   : > { %v213_v14 = vsel %vm212_vm1, %v211_v13, 0.0 }
  0xd2   : > { %214 = vadd.xlane.f32.xlu0 %v213_v14 }
 0x15f   : > { %v215_v17 = vpop.xlane.xlu0 %214 }
 0x160   : > { %v217_v18 = vadd.f32 %v216_v16, %v215_v17 }
 0x162   : > { %v218_v19 = vmax.f32 %v217_v18, 0.0 }
 0x164   : > { %v219_v20 = vmin.f32 %v218_v19, 1.0 }
 0x166   : > { %222 = vperm.xlu1 %383, %v219_v20  }
 0x1e5   : > { %v223_v25 = vpop.permute.xlu1 %222 }
 0x1e6   : > { %v230_v26 = vrot.slane %v223_v25, %v229_v24 }
 0x1e8   : > { %v232_v27 = vmul.f32 %v230_v26, %v187_v0 }
 0x1ea   : > { %233 = vst [vmem:[%s186_s10] sm:$0xff] %v232_v27 }
 0x1eb   : > { %429 = shalt.err (!%p426_p4)
}
 0x1ec   : > { %s430_s29 = scalar_lea.hbm %s635_s20, 128  ;;  %s434_s7 = scalar_lea.hbm %s682_s3, 256 }
 0x1ed   : > { %p431_p5 = scmp.ne.s32.totalorder %s635_s20, %s430_s29  ;;  %p435_p0 = scmp.lt.u32.totalorder %s635_s20, %s682_s3 }
 0x1ee   : > { %p436_p1 = scmp.lt.u32.totalorder %s434_s7, %s430_s29  ;;  %p438_p6 = scmp.lt.u32.totalorder %s430_s29, %s635_s20 }
 0x1ef   : > { %p432_p8 = pnand %p431_p5, %p691_p11 }
 0x1f0   : > { %p437_p3 = por %p436_p1, %p435_p0 }
 0x1f1   : > { %p433_p9 = pneg %p432_p8 }
 0x1f2   : > { %p439_p12 = por %p438_p6, %p437_p3 }
 0x1f4   : > { %p440_p13 = pnand %p439_p12, %p433_p9 }
 0x1f6   : > { %443 = shalt.err (!%p440_p13)
}
 0x1f7   : > { %337 = dma.vmem_to_hbm [thread:$0]  (%p691_p11), %s637_s11, 128, %s635_s20, %s235_s22  }
 0x1f8 PF: > { %s261_s23 = sand.u32 1, %s470_s12   ;;  %p692_p7 = scmp.ne.s32.totalorder %s687_s25, 0 }
 0x1f9   : > { %p693_p10 = scmp.ge.s32.totalorder %s482_s15, 2  ;;  %s262_s8 = scalar_lea.sflag [#allocation4], %s261_s23 }
 0x1fb   : > { %p344_p2 = pnand %p693_p10, %p692_p7 }
 0x1fd   : > { %465 = dma.done.wait (!%p344_p2), %s262_s8, 128  }
 0x1fe   : > { %467 = vsyncadd (!%p344_p2), %s262_s8, 4294967168  ;;  %p16_p4 = scmp.ge.s32.totalorder %s533_s18, 4   ;;  %s694_s12 = smov %s474_s13 }
 0x1ff   : > { %s695_s13 = smov %s478_s14  ;;  %s696_s14 = smov %s545_s21 }
 0x200   : > { %s697_s15 = smov %s533_s18  ;;  %18 = sbr.rel (!%p16_p4) target bundleno = 5 (0x5), region = 77 }
 0x207   :  { %267 = vsyncpa [#allocation3], 1 }
 0x208   :  { %269 = vsyncpa [#allocation3 + $0x1], 1 }
 0x209   :  { %270 = vsyncpa [#allocation4], 1 }
 0x20a   :  { %272 = vsyncpa [#allocation4 + $0x1], 1 }

</bundles_post_ra>
